<compile_context>
chip_gen: v7x
topology: tpu7x:2x2x1
jax: 0.10.0
libtpu: 0.0.40
codegen_flags: <defaults>
</compile_context>

<pallas_src>
import math
import jax
import jax.numpy as jnp
from jax import lax
from jax.experimental import pallas as pl
from jax.experimental.pallas import tpu as pltpu


# ----------------------------------------------------------------------------
# Fused kernel: one grid step per M tile.  All layers run in an unrolled loop
# over a VMEM-resident bf16 weight stack; the final LayerNormalization is
# fused so the activation hits HBM exactly once.
# ----------------------------------------------------------------------------
def _decoder_fused_kernel(x_ref, enc_ref, w_ref, alpha_ref, bias_ref, o_ref):
    D = x_ref.shape[-1]
    L = w_ref.shape[0]

    x0 = x_ref[...].astype(jnp.float32)          # (TM, D) fp32 activation
    enc_bf = enc_ref[...].astype(jnp.bfloat16)   # (TM, D) bf16 MXU operand

    def layer_body(l, x):
        # Static slices of the resident weight ref are free:
        #   rows [0:D]  = W_self, rows [D:2D] = W_cross   (bf16).
        ws = w_ref[l, pl.ds(0, D), :]
        wc = w_ref[l, pl.ds(D, D), :]
        upd = jnp.dot(x.astype(jnp.bfloat16), ws,
                      preferred_element_type=jnp.float32)
        upd = upd + jnp.dot(enc_bf, wc, preferred_element_type=jnp.float32)
        return x + upd                            # residual add in fp32

    x = lax.fori_loop(0, L, layer_body, x0, unroll=True)

    # Fused final LayerNormalization (PyTorch: unbiased std, (x-mean)/(std+eps)).
    mean = jnp.mean(x, axis=-1, keepdims=True)
    diff = x - mean
    var_unbiased = jnp.sum(diff * diff, axis=-1, keepdims=True) / (D - 1)
    std = jnp.sqrt(var_unbiased)
    # Exact reciprocal keeps fp32 layernorm parity; approx=True would move it
    # to the EUP at ~1e-4 relative error (cheap option if ever VALU-bound).
    inv = pl.reciprocal(std + 1e-6, approx=False)
    o_ref[...] = (alpha_ref[0] * diff * inv + bias_ref[0]).astype(o_ref.dtype)


def _pick_tm(m_padded, max_rows=512):
    """Largest multiple-of-8 divisor of the (padded) M that respects max_rows
    and leaves >=2 M tiles when possible (v7x megacore sharding)."""
    cap = min(max_rows, m_padded)
    if m_padded >= 16:
        cap = min(cap, m_padded // 2)
    cap = max(8, (cap // 8) * 8)
    tm = cap
    while tm >= 8:
        if m_padded % tm == 0:
            return tm
        tm -= 8
    return m_padded


def _vmem_limit_bytes():
    """Stay well under physical VMEM: ~48 MiB on v7x (64 MiB), 96 MiB on
    v5e/v6e (128 MiB)."""
    try:
        cap = pltpu.get_tpu_info().vmem_capacity_bytes
    except Exception:
        cap = 64 * 1024 * 1024
    return int(min(96 * 1024 * 1024, cap * 3 // 4))


# ----------------------------------------------------------------------------
# Decoder forward: one fused pallas_call for all layers + final layernorm.
# ----------------------------------------------------------------------------
def decoder_forward(x, encoder_output, src_mask, tgt_mask, layer_params, alpha, bias):
    del src_mask, tgt_mask  # accepted for signature parity; unused by stand-in layers
    B, S, D = x.shape
    M = B * S
    L = len(layer_params)

    # Stack per-layer weights as (L, 2D, D) in bf16 (native MXU operand):
    # rows [0:D] = W_self, rows [D:2D] = W_cross.
    w_all = jnp.stack(
        [jnp.concatenate([ws, wc], axis=0) for (ws, wc) in layer_params], axis=0
    ).astype(jnp.bfloat16)

    x2 = x.reshape(M, D)
    enc2 = encoder_output.reshape(M, D)

    # Pad M to a multiple of 8 so the tile is always a clean (8,128)-sublane
    # multiple and the grid divides evenly (padded rows are sliced off below).
    Mp = ((M + 7) // 8) * 8
    if Mp != M:
        pad = Mp - M
        x2 = jnp.pad(x2, ((0, pad), (0, 0)))
        enc2 = jnp.pad(enc2, ((0, pad), (0, 0)))

    tm = _pick_tm(Mp)
    grid = (Mp // tm,)

    out = pl.pallas_call(
        _decoder_fused_kernel,
        out_shape=jax.ShapeDtypeStruct((Mp, D), x.dtype),
        grid=grid,
        in_specs=[
            pl.BlockSpec((tm, D), lambda m: (m, 0)),           # x tile
            pl.BlockSpec((tm, D), lambda m: (m, 0)),           # enc tile
            pl.BlockSpec((L, 2 * D, D), lambda m: (0, 0, 0)),  # weights: resident, DMA'd once
            pl.BlockSpec(memory_space=pltpu.SMEM),             # alpha, shape (1,)
            pl.BlockSpec(memory_space=pltpu.SMEM),             # bias,  shape (1,)
        ],
        out_specs=pl.BlockSpec((tm, D), lambda m: (m, 0)),
        compiler_params=pltpu.CompilerParams(
            dimension_semantics=("parallel",),
            vmem_limit_bytes=_vmem_limit_bytes(),
        ),
    )(x2, enc2, w_all, alpha, bias)

    return out[:M].reshape(B, S, D)


# ----------------------------------------------------------------------------
# Pure-JAX reference (sanity check for the Pallas path)
# ----------------------------------------------------------------------------
def decoder_forward_ref(x, enc, layer_params, alpha, bias):
    for (w_self, w_cross) in layer_params:
        x = x + x @ w_self + enc @ w_cross
    mean = jnp.mean(x, axis=-1, keepdims=True)
    diff = x - mean
    std = jnp.sqrt(jnp.sum(diff * diff, axis=-1, keepdims=True) / (x.shape[-1] - 1))
    return alpha[0] * diff / (std + 1e-6) + bias[0]


if __name__ == "__main__":
    B, S, D = 2, 8, 32
    n_layers = 2

    key = jax.random.PRNGKey(0)
    kx, kenc, *kw = jax.random.split(key, 2 + 2 * n_layers)

    x = jax.random.normal(kx, (B, S, D), dtype=jnp.float32)
    encoder_output = jax.random.normal(kenc, (B, S, D), dtype=jnp.float32)
    src_mask = jnp.ones((B, 1, 1, S), dtype=jnp.float32)   # unused by stand-in layers
    tgt_mask = jnp.ones((B, 1, S, S), dtype=jnp.float32)   # unused by stand-in layers

    # Deterministic layer parameters (small scale to keep values tame).
    layer_params = []
    for li in range(n_layers):
        w_self = jax.random.normal(kw[2 * li], (D, D), dtype=jnp.float32) * (0.1 / math.sqrt(D))
        w_cross = jax.random.normal(kw[2 * li + 1], (D, D), dtype=jnp.float32) * (0.1 / math.sqrt(D))
        layer_params.append((w_self, w_cross))

    # LayerNormalization params: alpha = ones(1), bias = zeros(1), as in __init__.
    alpha = jnp.ones((1,), dtype=jnp.float32)
    bias = jnp.zeros((1,), dtype=jnp.float32)

    out = decoder_forward(x, encoder_output, src_mask, tgt_mask, layer_params, alpha, bias)
    out = jax.block_until_ready(out)

    ref = decoder_forward_ref(x, encoder_output, layer_params, alpha, bias)
    assert out.shape == (B, S, D)
    # bf16 MXU operands: ~1e-3 expected deviation vs the fp32 reference.
    assert jnp.allclose(out, ref, rtol=2e-2, atol=2e-2), "mismatch vs JAX reference"

    print("KERNEL_OK")
</pallas_src>

<mosaic_0001>
module attributes {stable_mosaic.version = 11 : i64} {
  func.func @_decoder_fused_kernel(%arg0: i32, %arg1: memref<8x32xf32, #tpu.memory_space<vmem>>, %arg2: memref<8x32xf32, #tpu.memory_space<vmem>>, %arg3: memref<2x64x32xbf16, #tpu.memory_space<vmem>>, %arg4: memref<1xf32, #tpu.memory_space<smem>>, %arg5: memref<1xf32, #tpu.memory_space<smem>>, %arg6: memref<8x32xf32, #tpu.memory_space<vmem>>) attributes {dimension_semantics = [#tpu.dimension_semantics<parallel>], iteration_bounds = array<i64: 2>, scalar_prefetch = 0 : i64, scratch_operands = 0 : i64, tpu.core_type = #tpu.core_type<tc>, window_params = [{transform_indices = @transform_0, window_bounds = array<i64: 8, 32>}, {transform_indices = @transform_1, window_bounds = array<i64: 8, 32>}, {pipeline_mode = #tpu.pipeline_mode<synchronous>, transform_indices = @transform_2, window_bounds = array<i64: 2, 64, 32>}, {transform_indices = @transform_3, window_bounds = array<i64: 1>}, {transform_indices = @transform_4, window_bounds = array<i64: 1>}, {transform_indices = @transform_5, window_bounds = array<i64: 8, 32>}]} {
    %c0 = arith.constant 0 : index
    %c0_0 = arith.constant 0 : index
    %0 = vector.load %arg1[%c0, %c0_0] : memref<8x32xf32, #tpu.memory_space<vmem>>, vector<8x32xf32>
    %c0_1 = arith.constant 0 : index
    %c0_2 = arith.constant 0 : index
    %1 = vector.load %arg2[%c0_1, %c0_2] : memref<8x32xf32, #tpu.memory_space<vmem>>, vector<8x32xf32>
    %2 = arith.truncf %1 : vector<8x32xf32> to vector<8x32xbf16>
    %c0_i32 = arith.constant 0 : i32
    %3 = arith.index_cast %c0_i32 : i32 to index
    %c0_3 = arith.constant 0 : index
    %c0_4 = arith.constant 0 : index
    %4 = vector.load %arg3[%3, %c0_3, %c0_4] : memref<2x64x32xbf16, #tpu.memory_space<vmem>>, vector<1x32x32xbf16>
    %5 = vector.shape_cast %4 : vector<1x32x32xbf16> to vector<32x32xbf16>
    %6 = arith.index_cast %c0_i32 : i32 to index
    %c32 = arith.constant 32 : index
    %c0_5 = arith.constant 0 : index
    %7 = vector.load %arg3[%6, %c32, %c0_5] : memref<2x64x32xbf16, #tpu.memory_space<vmem>>, vector<1x32x32xbf16>
    %8 = vector.shape_cast %7 : vector<1x32x32xbf16> to vector<32x32xbf16>
    %9 = arith.truncf %0 : vector<8x32xf32> to vector<8x32xbf16>
    %cst = arith.constant dense<0.000000e+00> : vector<8x32xf32>
    %10 = tpu.matmul %9, %5, %cst {dimension_numbers = #tpu.dot_dimension_numbers<[1], [0], [0], [1], [0, 0, 1, 1], [], []>} : vector<8x32xbf16>, vector<32x32xbf16>, vector<8x32xf32> -> vector<8x32xf32>
    %cst_6 = arith.constant dense<0.000000e+00> : vector<8x32xf32>
    %11 = tpu.matmul %2, %8, %cst_6 {dimension_numbers = #tpu.dot_dimension_numbers<[1], [0], [0], [1], [0, 0, 1, 1], [], []>} : vector<8x32xbf16>, vector<32x32xbf16>, vector<8x32xf32> -> vector<8x32xf32>
    %12 = arith.addf %10, %11 : vector<8x32xf32>
    %13 = arith.addf %0, %12 : vector<8x32xf32>
    %c1_i32 = arith.constant 1 : i32
    %14 = arith.index_cast %c1_i32 : i32 to index
    %c0_7 = arith.constant 0 : index
    %c0_8 = arith.constant 0 : index
    %15 = vector.load %arg3[%14, %c0_7, %c0_8] : memref<2x64x32xbf16, #tpu.memory_space<vmem>>, vector<1x32x32xbf16>
    %16 = vector.shape_cast %15 : vector<1x32x32xbf16> to vector<32x32xbf16>
    %17 = arith.index_cast %c1_i32 : i32 to index
    %c32_9 = arith.constant 32 : index
    %c0_10 = arith.constant 0 : index
    %18 = vector.load %arg3[%17, %c32_9, %c0_10] : memref<2x64x32xbf16, #tpu.memory_space<vmem>>, vector<1x32x32xbf16>
    %19 = vector.shape_cast %18 : vector<1x32x32xbf16> to vector<32x32xbf16>
    %20 = arith.truncf %13 : vector<8x32xf32> to vector<8x32xbf16>
    %cst_11 = arith.constant dense<0.000000e+00> : vector<8x32xf32>
    %21 = tpu.matmul %20, %16, %cst_11 {dimension_numbers = #tpu.dot_dimension_numbers<[1], [0], [0], [1], [0, 0, 1, 1], [], []>} : vector<8x32xbf16>, vector<32x32xbf16>, vector<8x32xf32> -> vector<8x32xf32>
    %cst_12 = arith.constant dense<0.000000e+00> : vector<8x32xf32>
    %22 = tpu.matmul %2, %19, %cst_12 {dimension_numbers = #tpu.dot_dimension_numbers<[1], [0], [0], [1], [0, 0, 1, 1], [], []>} : vector<8x32xbf16>, vector<32x32xbf16>, vector<8x32xf32> -> vector<8x32xf32>
    %23 = arith.addf %21, %22 : vector<8x32xf32>
    %24 = arith.addf %13, %23 : vector<8x32xf32>
    %c2_i32 = arith.constant 2 : i32
    %cst_13 = arith.constant dense<0.000000e+00> : vector<8xf32>
    %25 = vector.multi_reduction <add>, %24, %cst_13 [1] : vector<8x32xf32> to vector<8xf32>
    %26 = vector.shape_cast %25 : vector<8xf32> to vector<8x1xf32>
    %cst_14 = arith.constant 3.200000e+01 : f32
    %27 = vector.broadcast %cst_14 : f32 to vector<8x1xf32>
    %28 = arith.divf %26, %27 : vector<8x1xf32>
    %29 = vector.broadcast %28 : vector<8x1xf32> to vector<8x32xf32>
    %30 = arith.subf %24, %29 : vector<8x32xf32>
    %31 = arith.mulf %30, %30 : vector<8x32xf32>
    %cst_15 = arith.constant dense<0.000000e+00> : vector<8xf32>
    %32 = vector.multi_reduction <add>, %31, %cst_15 [1] : vector<8x32xf32> to vector<8xf32>
    %33 = vector.shape_cast %32 : vector<8xf32> to vector<8x1xf32>
    %cst_16 = arith.constant 3.100000e+01 : f32
    %34 = vector.broadcast %cst_16 : f32 to vector<8x1xf32>
    %35 = arith.divf %33, %34 : vector<8x1xf32>
    %36 = math.sqrt %35 : vector<8x1xf32>
    %cst_17 = arith.constant 9.99999997E-7 : f32
    %37 = vector.broadcast %cst_17 : f32 to vector<8x1xf32>
    %38 = arith.addf %36, %37 : vector<8x1xf32>
    %39 = tpu.reciprocal %38 : vector<8x1xf32> -> vector<8x1xf32>
    %c0_18 = arith.constant 0 : index
    %40 = memref.load %arg4[%c0_18] : memref<1xf32, #tpu.memory_space<smem>>
    %41 = vector.broadcast %40 : f32 to vector<8x32xf32>
    %42 = arith.mulf %41, %30 : vector<8x32xf32>
    %43 = vector.broadcast %39 : vector<8x1xf32> to vector<8x32xf32>
    %44 = arith.mulf %42, %43 : vector<8x32xf32>
    %c0_19 = arith.constant 0 : index
    %45 = memref.load %arg5[%c0_19] : memref<1xf32, #tpu.memory_space<smem>>
    %46 = vector.broadcast %45 : f32 to vector<8x32xf32>
    %47 = arith.addf %44, %46 : vector<8x32xf32>
    %c0_20 = arith.constant 0 : index
    %c0_21 = arith.constant 0 : index
    %48 = vector.load %arg6[%c0_20, %c0_21] : memref<8x32xf32, #tpu.memory_space<vmem>>, vector<8x32xf32>
    tpu.vector_store %arg6[%c0_20, %c0_21], %47 {strides = array<i32>} : memref<8x32xf32, #tpu.memory_space<vmem>>, vector<8x32xf32>,
    return
  }
  func.func @transform_0(%arg0: i32) -> (i32, i32) {
    %c0_i32 = arith.constant 0 : i32
    %c0_i32_0 = arith.constant 0 : i32
    return %arg0, %c0_i32 : i32, i32
  }
  func.func @transform_1(%arg0: i32) -> (i32, i32) {
    %c0_i32 = arith.constant 0 : i32
    %c0_i32_0 = arith.constant 0 : i32
    return %arg0, %c0_i32 : i32, i32
  }
  func.func @transform_2(%arg0: i32) -> (i32, i32, i32) {
    %c0_i32 = arith.constant 0 : i32
    %c0_i32_0 = arith.constant 0 : i32
    %c0_i32_1 = arith.constant 0 : i32
    %c0_i32_2 = arith.constant 0 : i32
    return %c0_i32, %c0_i32_0, %c0_i32_1 : i32, i32, i32
  }
  func.func @transform_3(%arg0: i32) -> i32 {
    %c0_i32 = arith.constant 0 : i32
    %c0_i32_0 = arith.constant 0 : i32
    return %c0_i32 : i32
  }
  func.func @transform_4(%arg0: i32) -> i32 {
    %c0_i32 = arith.constant 0 : i32
    %c0_i32_0 = arith.constant 0 : i32
    return %c0_i32 : i32
  }
  func.func @transform_5(%arg0: i32) -> (i32, i32) {
    %c0_i32 = arith.constant 0 : i32
    %c0_i32_0 = arith.constant 0 : i32
    return %arg0, %c0_i32 : i32, i32
  }
}

</mosaic_0001>

<bundles_post_ra>
// kernel: tpu_custom_call.1
= control target key start
LH: loop header
LB: loop body
LE: loop exit
PB: predicated region body
PF: predicated region fallthrough
CT: control target
= control target key end

     0   :  { %s965_s0 = inlined_call_operand.vmem [shape: f32[16,32], index: 0, kind: input, shape index: {}]   ;;  %s966_s1 = inlined_call_operand.vmem [shape: f32[16,32], index: 1, kind: input, shape index: {}]   ;;  %s967_s2 = inlined_call_operand.vmem [shape: bf16[2,64,32], index: 2, kind: input, shape index: {}]   ;;  %s968_s3 = inlined_call_operand.<no memory space> [shape: f32[1], index: 3, kind: input, shape index: {}]   ;;  %s969_s4 = inlined_call_operand.<no memory space> [shape: f32[1], index: 4, kind: input, shape index: {}]   ;;  %s970_s5 = inlined_call_operand.hbm [shape: f32[16,32], index: 5, kind: output, shape index: {}]  }
   0x1   :  { %10 = sst [smem:[#allocation2]] %s968_s3 }
   0x2   :  { %11 = sst [smem:[#allocation3]] %s969_s4 }
   0x3   :  { %12 = vsyncpa [#allocation5], 0 }
   0x4   :  { %14 = vsyncpa [#allocation5 + $0x1], 0  ;;  %s827_s22 = smov 0   ;;  %s829_s23 = smov 0  }
   0x5   :  { %s831_s24 = smov 0   ;;  %s833_s25 = smov 0  }
   0x6 LB: > { %s848_s3 = sadd.s32 4294967295, %s786_s25   ;;  %s596_s4 = sadd.s32 4294967294, %s786_s25   ;;  %s786_s25 = sphi %s833_s25, %s976_s25   ;;  %s782_s24 = sphi %s831_s24, %s975_s24   ;;  %s778_s23 = sphi %s829_s23, %s974_s23   ;;  %s774_s22 = sphi %s827_s22, %s973_s22  }
   0x7   : > { %s852_s26 = sadd.s32 1, %s786_s25   ;;  %s142_s27 = sadd.s32 1, %s782_s24 }
   0x8   : > { %s139_s28 = ssub.s32 %s786_s25, %s852_s26  ;;  %p152_p0 = scmp.ne.s32.totalorder %s782_s24, %s778_s23 }
   0x9   : > { %p140_p1 = scmp.eq.s32.totalorder %s139_s28, 0  ;;  %p153_p2 = scmp.eq.s32.totalorder %s848_s3, 1 }
   0xa   : > { %p158_p3 = scmp.ne.s32.totalorder %s778_s23, %s774_s22  ;;  %p159_p4 = scmp.eq.s32.totalorder %s596_s4, 1 }
   0xb   : > { %s863_s29 = scalar_select %p140_p1, %s782_s24, %s142_s27  }
   0xc   : > { %p865_p5 = por %p153_p2, %p152_p0  ;;  %p869_p6 = por %p159_p4, %p158_p3 }
   0xd   : > { %p599_p7 = scmp.ge.s32.totalorder %s786_s25, 1  ;;  %p200_p8 = scmp.lt.s32.totalorder %s786_s25, 3 }
   0xf   : > { %p201_p9 = pnand %p599_p7, %p200_p8 }
  0x10   : > { %v712_v0 = vld [vmem:[%s967_s2 + $0x10] sm:$0xff] (!%p201_p9)   ;;  %v788_v1 = vmov (!%p201_p9), 0.0   ;;  %v713_v2 = vld [vmem:[%s967_s2] sm:$0xff] (!%p201_p9)   ;;  %v714_v3 = vld [vmem:[%s967_s2 + $0x18] sm:$0xff] (!%p201_p9)   ;;  %vm789_vm0 = vmmov (!%p201_p9), 0   ;;  %p231_p10 = scmp.lt.s32.totalorder (!%p201_p9), %s848_s3, 1 }
  0x11   : > { %204 = sbr.rel (%p201_p9) target bundleno = 806 (0x326), region = 40  ;;  %639 = vmatprep.subr.bf16.mxu0 (!%p201_p9), %v788_v1  ;;  %647 = vmatprep.subr.bf16.mxu1 (!%p201_p9), %v788_v1  ;;  %v715_v4 = vld [vmem:[%s967_s2 + $0x8] sm:$0xff] (!%p201_p9)   ;;  %v716_v5 = vld [vmem:[%s967_s2 + $0x30] sm:$0xff] (!%p201_p9)   ;;  %vm264_vm1 = vcmask (!%p201_p9), 261120   ;;  %v717_v8 = vld [vmem:[%s967_s2 + $0x20] sm:$0xff] (!%p201_p9)   ;;  %s503_s13 = sld [smem:[#allocation2]] (!%p201_p9) }
  0x12   : > { %640 = vmatpush3.bf16.msra.mxu0 (!%p201_p9), %v712_v0  ;;  %643 = vmatprep.mubr.msk.bf16.mxu0 (!%p201_p9), %vm789_vm0, %v788_v1  ;;  %v718_v11 = vld [vmem:[%s967_s2 + $0x38] sm:$0xff] (!%p201_p9)   ;;  %v719_v12 = vld [vmem:[%s967_s2 + $0x28] sm:$0xff] (!%p201_p9)   ;;  %s228_s14 = sand.u32 (!%p201_p9), 1, %s778_s23   ;;  %s624_s17 = sshll.u32 (!%p201_p9), %s848_s3, 7 }
  0x13   : > { %648 = vmatpush3.bf16.msra.mxu1 (!%p201_p9), %v713_v2  ;;  %641 = vmatprep.subr.bf16.mxu0 (!%p201_p9), %v788_v1  ;;  %s512_s27 = scalar_lea.sflag (!%p201_p9), [#allocation5], %s228_s14 }
  0x14   : > { %649 = vmatprep.subr.bf16.mxu1 (!%p201_p9), %v788_v1  ;;  %651 = vmatprep.mubr.msk.bf16.mxu1 (!%p201_p9), %vm789_vm0, %v788_v1 }
  0x16   : > { %642 = vmatpush3.bf16.msra.mxu0 (!%p201_p9), %v714_v3 }
  0x17   : > { %650 = vmatpush3.bf16.msra.mxu1 (!%p201_p9), %v715_v4  ;;  %655 = vmatprep.subr.bf16.mxu0 (!%p201_p9), %v788_v1  ;;  %v504_v48 = vstv (!%p201_p9), %s503_s13 }
  0x18   : > { %s232_s15 = scalar_select %p231_p10, %s848_s3, 1  ;;  %663 = vmatprep.subr.bf16.mxu1 %v788_v1 }
  0x19   : > { %s790_s3 = smov [#allocation4]  }
  0x1a   : > { %s601_s16 = sshll.u32 %s232_s15, 3  ;;  %s507_s15 = sld [smem:[#allocation3]] }
  0x1b   : > { %s238_s19 = scalar_lea.vmem %s966_s1, %s601_s16  ;;  %s234_s4 = scalar_lea.vmem %s965_s0, %s601_s16 }
  0x1c   : > { %v241_v6 = vld [vmem:[%s238_s19] sm:$0xff]  ;;  %s600_s16 = sshll.u32 %s228_s14, 3  ;;  %s728_s7 = sshll.u32 %s790_s3, 4  ;;  %s729_s7 = int_to_ptr.vmem [resolvable:$false] %s728_s7 }
  0x1d   : > { %v240_v7 = vld [vmem:[%s234_s4] sm:$0xff]  ;;  %v242_v9 = vpack.c.bf16 %v241_v6, %v241_v6  ;;  %s230_s18 = scalar_lea.vmem [#allocation4], %s600_s16  ;;  %s922_s4 = scalar_lea.hbm %s970_s5, %s624_s17 }
  0x1e   : > { %v251_v10 = vpack.c.bf16 %v240_v7, %v240_v7  ;;  %s525_s19 = sshll.u32 %s230_s18, 4  ;;  %s730_s8 = scalar_lea.vmem %s729_s7, 256  ;;  %s924_s19 = int_to_ptr.vmem [resolvable:$true] %s525_s19 }
  0x1f   : > { %644 = vmatmul.mubr.msk.bf16.vlgmr.msra.gmra.mrb[0].mxu0 %vm264_vm1, %v242_v9  ;;  %s724_s28 = scalar_lea.vmem %s924_s19, 128  ;;  %p731_p0 = scmp.lt.s32.totalorder %s924_s19, %s729_s7 }
  0x20   : > { %652 = vmatmul.mubr.msk.bf16.vlgmr.msra.gmra.mrb[0].mxu1 %vm264_vm1, %v251_v10  ;;  %656 = vmatpush3.bf16.msra.mxu0 %v716_v5  ;;  %v508_v51 = vstv %s507_s15  ;;  %p725_p11 = scmp.ne.s32.totalorder %s924_s19, %s724_s28  ;;  %p732_p1 = scmp.lt.s32.totalorder %s730_s8, %s724_s28 }
  0x21   : > { %664 = vmatpush3.bf16.msra.mxu1 %v717_v8  ;;  %657 = vmatprep.subr.bf16.mxu0 %v788_v1 }
  0x22   : > { %665 = vmatprep.subr.bf16.mxu1 %v788_v1  ;;  %659 = vmatprep.mubr.msk.bf16.mxu0 %vm789_vm0, %v788_v1  ;;  %p726_p12 = pnand %p725_p11, %p865_p5  ;;  %p733_p2 = por %p732_p1, %p731_p0 }
  0x23   : > { %667 = vmatprep.mubr.msk.bf16.mxu1 %vm789_vm0, %v788_v1 }
  0x24   : > { %658 = vmatpush3.bf16.msra.mxu0 %v718_v11  ;;  %p727_p13 = pneg %p726_p12 }
  0x25   : > { %666 = vmatpush3.bf16.msra.mxu1 %v719_v12 }
  0x26   : > { %p734_p3 = pnand %p733_p2, %p727_p13 }
  0x27   : > { %660 = vmatmul.mubr.msk.bf16.vlgmr.msra.gmra.mrb[4].mxu0 %vm264_vm1, %v242_v9 }
  0xf2   : > { %v302_v13 = vpop.f32.mrb[0].mxu0 }
  0xf3   : > { %v357_v14 = vpop.f32.mrb[0].mxu1  ;;  %v645_v16 = vpop.f32.mrb[1].mxu0 }
  0xf4   : > { %v358_v15 = vadd.f32 %v357_v14, %v302_v13  ;;  %v653_v17 = vpop.f32.mrb[1].mxu1  ;;  %v305_v18 = vpop.f32.mrb[2].mxu0 }
  0xf5   : > { %v360_v19 = vpop.f32.mrb[2].mxu1  ;;  %v646_v21 = vpop.f32.mrb[3].mxu0 }
  0xf6   : > { %v363_v20 = vadd.f32 %v358_v15, %v240_v7  ;;  %v654_v22 = vpop.f32.mrb[3].mxu1 }
  0xf8   : > { %v373_v23 = vpack.c.bf16 %v363_v20, %v363_v20 }
  0xfa   : > { %668 = vmatmul.mubr.msk.bf16.vlgmr.msra.gmra.mrb[4].mxu1 %vm264_vm1, %v373_v23  ;;  %v420_v24 = vpop.f32.mrb[4].mxu0 }
  0xfb   : > { %v661_v25 = vpop.f32.mrb[5].mxu0 }
  0xfc   : > { %v423_v26 = vpop.f32.mrb[6].mxu0 }
  0xfd   : > { %v662_v27 = vpop.f32.mrb[7].mxu0 }
 0x1cd   : > { %v475_v28 = vpop.f32.mrb[4].mxu1 }
 0x1ce   : > { %v476_v29 = vadd.f32 %v475_v28, %v420_v24  ;;  %v669_v30 = vpop.f32.mrb[5].mxu1 }
 0x1cf   : > { %v478_v31 = vpop.f32.mrb[6].mxu1 }
 0x1d0   : > { %v670_v32 = vpop.f32.mrb[7].mxu1  ;;  %v481_v33 = vadd.f32 %v476_v29, %v363_v20 }
 0x1d2   : > { %v482_v34 = vsel %vm264_vm1, %v481_v33, 0.0 }
 0x1d3   : > { %483 = vadd.xlane.f32.xlu0 %v482_v34 }
 0x260   : > { %v484_v35 = vpop.xlane.xlu0 %483 }
 0x261   : > { %v486_v36 = vmul.f32 0.03125, %v484_v35 }
 0x263   : > { %v487_v37 = vsub.f32 %v481_v33, %v486_v36 }
 0x265   : > { %v488_v38 = vmul.f32 %v487_v37, %v487_v37  ;;  %v505_v49 = vmul.f32 %v504_v48, %v487_v37 }
 0x267   : > { %v489_v39 = vsel %vm264_vm1, %v488_v38, 0.0 }
 0x268   : > { %490 = vadd.xlane.f32.xlu0 %v489_v39 }
 0x2f5   : > { %v491_v40 = vpop.xlane.xlu0 %490 }
 0x2f6   : > { %v493_v41 = vmul.f32 0.032258064, %v491_v40 }
 0x2f8   : > { %720 = vrsqrt.f32 %v493_v41  ;;  %vm496_vm2 = vcmp.eq.f32.partialorder %v493_v41, inf  ;;  %v499_v44 = vand.u32 2147483648, %v493_v41  ;;  %vm498_vm3 = vcmp.eq.f32.partialorder %v493_v41, 0.0 }
 0x302   : > { %v721_v42 = vpop.eup %720 }
 0x303   : > { %v495_v43 = vmul.f32 %v721_v42, %v493_v41 }
 0x305   : > { %v497_v45 = vsel %vm496_vm2, %v493_v41, %v495_v43 }
 0x306   : > { %v500_v46 = vsel %vm498_vm3, %v499_v44, %v497_v45 }
 0x307   : > { %v501_v47 = vadd.f32 1e-06, %v500_v46 }
 0x309   : > { %722 = vrcp.f32 %v501_v47 }
 0x313   : > { %v723_v50 = vpop.eup %722 }
 0x314   : > { %v506_v52 = vmul.f32 %v723_v50, %v505_v49 }
 0x316   : > { %v509_v53 = vadd.f32 %v508_v51, %v506_v52 }
 0x318   : > { %510 = vst.msk [vmem:[%s230_s18] sm:$0xff] %vm264_vm1, %v509_v53 }
 0x319   : > { %737 = shalt.err (!%p734_p3)
}
 0x31a   : > { %s738_s9 = scalar_lea.hbm %s922_s4, 128  ;;  %s742_s12 = scalar_lea.hbm %s970_s5, 256 }
 0x31b   : > { %p739_p4 = scmp.ne.s32.totalorder %s922_s4, %s738_s9  ;;  %p743_p9 = scmp.lt.u32.totalorder %s922_s4, %s970_s5 }
 0x31c   : > { %p744_p10 = scmp.lt.u32.totalorder %s742_s12, %s738_s9  ;;  %p746_p12 = scmp.lt.u32.totalorder %s738_s9, %s922_s4 }
 0x31d   : > { %p740_p7 = pnand %p739_p4, %p865_p5 }
 0x31e   : > { %p745_p11 = por %p744_p10, %p743_p9 }
 0x31f   : > { %p741_p8 = pneg %p740_p7 }
 0x320   : > { %p747_p13 = por %p746_p12, %p745_p11 }
 0x322   : > { %p748_p0 = pnand %p747_p13, %p741_p8 }
 0x324   : > { %751 = shalt.err (!%p748_p0)
}
 0x325   : > { %671 = dma.vmem_to_hbm [thread:$0]  (%p865_p5), %s924_s19, 128, %s922_s4, %s512_s27  }
 0x326 PF: > { %p677_p1 = scmp.ge.s32.totalorder %s786_s25, 2  ;;  %s537_s15 = sand.u32 1, %s774_s22  }
 0x327   : > { %s538_s16 = scalar_lea.sflag [#allocation5], %s537_s15 }
 0x328   : > { %p674_p2 = pnand %p677_p1, %p869_p6 }
 0x32a   : > { %769 = dma.done.wait (!%p674_p2), %s538_s16, 128  }
 0x32b   : > { %771 = vsyncadd (!%p674_p2), %s538_s16, 4294967168  ;;  %p17_p3 = scmp.ge.s32.totalorder %s852_s26, 4   ;;  %s973_s22 = smov %s778_s23 }
 0x32c   : > { %s974_s23 = smov %s782_s24  ;;  %s975_s24 = smov %s863_s29 }
 0x32d   : > { %s976_s25 = smov %s852_s26  ;;  %19 = sbr.rel (!%p17_p3) target bundleno = 6 (0x6), region = 79 }
 0x334   :  { %543 = vsyncpa [#allocation5], 1 }
 0x335   :  { %545 = vsyncpa [#allocation5 + $0x1], 1 }

</bundles_post_ra>
